<compile_context>
chip_gen: v7x
topology: tpu7x:2x2x1
jax: 0.10.0
libtpu: 0.0.40
codegen_flags: <defaults>
</compile_context>

<pallas_src>
import functools

import numpy as np
import jax
import jax.numpy as jnp
from jax.experimental import pallas as pl
from jax.experimental.pallas import tpu as pltpu


def _spatial_softmax_kernel(inv_t_ref, feat_ref, pos_ref, out_ref):
    # inv_t_ref : (1, 1)    SMEM  -- 1 / temperature
    # feat_ref  : (TR, HW)  VMEM  -- one row tile of the flattened features
    # pos_ref   : (HW, 3)   VMEM  -- columns [pos_x, pos_y, ones]
    # out_ref   : (TR, 2)   VMEM  -- [expected_x, expected_y] per row
    inv_t = inv_t_ref[0, 0]
    f = feat_ref[...].astype(jnp.float32)

    # Numerically-stable softmax numerator.  exp((f - m) * inv_t) equals
    # exp(f*inv_t - m*inv_t); for inv_t > 0, m*inv_t is the row max of
    # f*inv_t, so the softmax value is unchanged.  One vmul instead of a
    # full-tile divide; exp goes to the EUP (its own bundle slot).
    m = jnp.max(f, axis=-1, keepdims=True)
    e = jnp.exp((f - m) * inv_t)

    # One MXU matmul fuses the three cross-lane reductions:
    #   s[:, 0] = sum(e * pos_x),  s[:, 1] = sum(e * pos_y),  s[:, 2] = sum(e)
    s = jnp.dot(e, pos_ref[...], preferred_element_type=jnp.float32)  # (TR, 3)

    # Normalize only the reduced (TR, 2) tensor.  approx=False keeps the
    # 1e-5 tolerance safe; the tensor is tiny so the exact reciprocal is cheap.
    out_ref[...] = s[:, :2] * pl.reciprocal(s[:, 2:3], approx=False)


def _pick_row_tile(rows, hw, max_db_bytes=8 * 1024 * 1024, tr_cap=2048):
    """Row tile: multiple of 8 (f32 sublane); double-buffered input
    (2 * TR * HW * 4 B) kept under max_db_bytes so it fits the scoped-VMEM
    defaults on v5e (16 MiB), v6e (32 MiB) and v7x (32 MiB of 64 MiB)."""
    tr = max_db_bytes // (2 * hw * 4)
    tr = max(8, (tr // 8) * 8)
    tr = min(tr, tr_cap)
    rows_ceil8 = ((rows + 7) // 8) * 8
    return min(tr, rows_ceil8)


@functools.partial(jax.jit, static_argnames=("channel", "row_tile"))
def spatial_softmax(feature, pos_x, pos_y, temperature, channel, row_tile=None):
    """feature: (N, C, H, W) float32/bf16 (NCHW). Returns (N, 2*C) float32."""
    N, C, H, W = feature.shape
    assert C == channel
    HW = H * W
    rows = N * C

    feat2d = feature.reshape(rows, HW)                      # glue: view(-1, H*W)

    # Single (HW, 3) matmul RHS: [pos_x, pos_y, ones].  One resident buffer,
    # one DMA descriptor, and directly usable by the MXU.
    pos_mat = jnp.stack(
        [pos_x.astype(jnp.float32),
         pos_y.astype(jnp.float32),
         jnp.ones((HW,), jnp.float32)],
        axis=1)                                             # (HW, 3)

    inv_t = (1.0 / jnp.asarray(temperature, jnp.float32)).reshape(1, 1)

    TR = row_tile if row_tile is not None else _pick_row_tile(rows, HW)
    grid = (pl.cdiv(rows, TR),)
    # Ragged last tiles (rows % TR != 0) are fine: each output row depends
    # only on its own input row, and the padded rows' writes are masked.

    out = pl.pallas_call(
        _spatial_softmax_kernel,
        out_shape=jax.ShapeDtypeStruct((rows, 2), jnp.float32),
        grid_spec=pl.GridSpec(
            grid=grid,
            in_specs=[
                pl.BlockSpec((1, 1), lambda i: (0, 0),
                             memory_space=pltpu.MemorySpace.SMEM),
                pl.BlockSpec((TR, HW), lambda i: (i, 0)),
                pl.BlockSpec((HW, 3), lambda i: (0, 0)),
            ],
            out_specs=pl.BlockSpec((TR, 2), lambda i: (i, 0)),
        ),
        compiler_params=pltpu.CompilerParams(
            dimension_semantics=("parallel",)),
    )(inv_t, feat2d, pos_mat)

    # cat([ex, ey], dim=1).view(-1, 2*C)
    return out.reshape(N, 2 * C)


def make_pos_buffers(height, width):
    # Exact replica of the PyTorch __init__ buffer construction
    # (meshgrid(linspace(H), linspace(W)) ordering, kept for parity).
    pos_x, pos_y = np.meshgrid(np.linspace(-1.0, 1.0, height),
                               np.linspace(-1.0, 1.0, width))
    pos_x = pos_x.reshape(height * width).astype(np.float32)
    pos_y = pos_y.reshape(height * width).astype(np.float32)
    return jnp.asarray(pos_x), jnp.asarray(pos_y)


def _reference(feature, pos_x, pos_y, temperature, channel):
    N, C, H, W = feature.shape
    f2d = feature.reshape(N * C, H * W).astype(jnp.float32) / temperature
    p = jax.nn.softmax(f2d, axis=-1)
    ex = jnp.sum(pos_x[None, :] * p, axis=1, keepdims=True)
    ey = jnp.sum(pos_y[None, :] * p, axis=1, keepdims=True)
    return jnp.concatenate([ex, ey], axis=1).reshape(N, 2 * C)


if __name__ == "__main__":
    key = jax.random.PRNGKey(0)

    # --- main check: module-sized input ---------------------------------
    N, C, H, W = 2, 4, 16, 16
    temperature = 1.0  # module default when temperature=None
    k0, k1 = jax.random.split(key)
    feature = jax.random.normal(k0, (N, C, H, W), dtype=jnp.float32)
    pos_x, pos_y = make_pos_buffers(H, W)

    out = spatial_softmax(feature, pos_x, pos_y, temperature, C)
    out = jax.block_until_ready(out)
    ref = _reference(feature, pos_x, pos_y, temperature, C)
    np.testing.assert_allclose(np.asarray(out), np.asarray(ref),
                               rtol=1e-5, atol=1e-5)
    assert out.shape == (N, 2 * C)

    # --- second check: multi-tile grid (pipelined, parallel row tiles) ---
    N2, C2 = 4, 8                      # rows = 32, row_tile = 8 -> grid = (4,)
    feature2 = jax.random.normal(k1, (N2, C2, H, W), dtype=jnp.float32)
    out2 = spatial_softmax(feature2, pos_x, pos_y, 0.5, C2, row_tile=8)
    out2 = jax.block_until_ready(out2)
    ref2 = _reference(feature2, pos_x, pos_y, 0.5, C2)
    np.testing.assert_allclose(np.asarray(out2), np.asarray(ref2),
                               rtol=1e-5, atol=1e-5)

    print("KERNEL_OK")
</pallas_src>

<mosaic_0001>
module attributes {stable_mosaic.version = 11 : i64} {
  func.func @_spatial_softmax_kernel(%arg0: i32, %arg1: memref<1x1xf32, #tpu.memory_space<smem>>, %arg2: memref<8x256xf32, #tpu.memory_space<vmem>>, %arg3: memref<256x3xf32, #tpu.memory_space<vmem>>, %arg4: memref<8x2xf32, #tpu.memory_space<vmem>>) attributes {dimension_semantics = [#tpu.dimension_semantics<parallel>], iteration_bounds = array<i64: 1>, scalar_prefetch = 0 : i64, scratch_operands = 0 : i64, tpu.core_type = #tpu.core_type<tc>, window_params = [{transform_indices = @transform_0, window_bounds = array<i64: 1, 1>}, {transform_indices = @transform_1, window_bounds = array<i64: 8, 256>}, {pipeline_mode = #tpu.pipeline_mode<synchronous>, transform_indices = @transform_2, window_bounds = array<i64: 256, 3>}, {transform_indices = @transform_3, window_bounds = array<i64: 8, 2>}]} {
    %c0 = arith.constant 0 : index
    %c0_0 = arith.constant 0 : index
    %0 = memref.load %arg1[%c0, %c0_0] : memref<1x1xf32, #tpu.memory_space<smem>>
    %c0_1 = arith.constant 0 : index
    %c0_2 = arith.constant 0 : index
    %1 = vector.load %arg2[%c0_1, %c0_2] : memref<8x256xf32, #tpu.memory_space<vmem>>, vector<8x256xf32>
    %cst = arith.constant dense<0xFF800000> : vector<8xf32>
    %2 = vector.multi_reduction <maximumf>, %1, %cst [1] : vector<8x256xf32> to vector<8xf32>
    %3 = vector.shape_cast %2 : vector<8xf32> to vector<8x1xf32>
    %4 = vector.broadcast %3 : vector<8x1xf32> to vector<8x256xf32>
    %5 = arith.subf %1, %4 : vector<8x256xf32>
    %6 = vector.broadcast %0 : f32 to vector<8x256xf32>
    %7 = arith.mulf %5, %6 : vector<8x256xf32>
    %8 = math.exp %7 : vector<8x256xf32>
    %c0_3 = arith.constant 0 : index
    %c0_4 = arith.constant 0 : index
    %9 = vector.load %arg3[%c0_3, %c0_4] : memref<256x3xf32, #tpu.memory_space<vmem>>, vector<256x3xf32>
    %cst_5 = arith.constant dense<0.000000e+00> : vector<8x3xf32>
    %10 = tpu.matmul %8, %9, %cst_5 {dimension_numbers = #tpu.dot_dimension_numbers<[1], [0], [0], [1], [0, 0, 1, 1], [], []>} : vector<8x256xf32>, vector<256x3xf32>, vector<8x3xf32> -> vector<8x3xf32>
    %11 = vector.extract_strided_slice %10 {offsets = [0, 0], sizes = [8, 2], strides = [1, 1]} : vector<8x3xf32> to vector<8x2xf32>
    %12 = vector.extract_strided_slice %10 {offsets = [0, 2], sizes = [8, 1], strides = [1, 1]} : vector<8x3xf32> to vector<8x1xf32>
    %13 = tpu.reciprocal %12 : vector<8x1xf32> -> vector<8x1xf32>
    %14 = vector.broadcast %13 : vector<8x1xf32> to vector<8x2xf32>
    %15 = arith.mulf %11, %14 : vector<8x2xf32>
    %c0_6 = arith.constant 0 : index
    %c0_7 = arith.constant 0 : index
    %16 = vector.load %arg4[%c0_6, %c0_7] : memref<8x2xf32, #tpu.memory_space<vmem>>, vector<8x2xf32>
    tpu.vector_store %arg4[%c0_6, %c0_7], %15 {strides = array<i32>} : memref<8x2xf32, #tpu.memory_space<vmem>>, vector<8x2xf32>,
    return
  }
  func.func @transform_0(%arg0: i32) -> (i32, i32) {
    %c0_i32 = arith.constant 0 : i32
    %c0_i32_0 = arith.constant 0 : i32
    %c0_i32_1 = arith.constant 0 : i32
    return %c0_i32, %c0_i32_0 : i32, i32
  }
  func.func @transform_1(%arg0: i32) -> (i32, i32) {
    %c0_i32 = arith.constant 0 : i32
    %c0_i32_0 = arith.constant 0 : i32
    return %arg0, %c0_i32 : i32, i32
  }
  func.func @transform_2(%arg0: i32) -> (i32, i32) {
    %c0_i32 = arith.constant 0 : i32
    %c0_i32_0 = arith.constant 0 : i32
    %c0_i32_1 = arith.constant 0 : i32
    return %c0_i32, %c0_i32_0 : i32, i32
  }
  func.func @transform_3(%arg0: i32) -> (i32, i32) {
    %c0_i32 = arith.constant 0 : i32
    %c0_i32_0 = arith.constant 0 : i32
    return %arg0, %c0_i32 : i32, i32
  }
}

</mosaic_0001>

<bundles_post_ra>
// kernel: spatial_softmax.1
= control target key start
LH: loop header
LB: loop body
LE: loop exit
PB: predicated region body
PF: predicated region fallthrough
CT: control target
= control target key end

     0   :  { %v220_v61 = vmov 2   ;;  %vm139_vm0 = vcmask 15360   ;;  %s357_s1 = inlined_call_operand.vmem [shape: f32[8,256], index: 1, kind: input, shape index: {}]   ;;  %s358_s2 = inlined_call_operand.vmem [shape: f32[256,3], index: 2, kind: input, shape index: {}]   ;;  %s359_s0 = inlined_call_operand.<no memory space> [shape: f32[1,1], index: 0, kind: input, shape index: {}]   ;;  %s360_s3 = inlined_call_operand.vmem [shape: f32[8,2], index: 3, kind: output, shape index: {}]  }
   0x1   :  { %v244_v0 = vld [vmem:[%s357_s1] sm:$0xff]  ;;  %v249_v1 = vld [vmem:[%s357_s1 + $0x8] sm:$0xff]  ;;  %v48_v9 = vld [vmem:[%s358_s2 + $0x90] sm:$0xff]  ;;  %v23_v52 = vstv %s359_s0  ;;  %213 = vset.pattern.permute.xlu0 %v220_v61 }
   0x2   :  { %v46_v2 = vld [vmem:[%s358_s2 + $0x80] sm:$0xff]  ;;  %v18_v3 = vmax.f32 %v244_v0, %v249_v1  ;;  %v47_v4 = vld [vmem:[%s358_s2 + $0x88] sm:$0xff]  ;;  %v49_v10 = vld [vmem:[%s358_s2 + $0x98] sm:$0xff] }
   0x3   :  { %v30_v5 = vld [vmem:[%s358_s2] sm:$0xff]  ;;  %v31_v6 = vld [vmem:[%s358_s2 + $0x8] sm:$0xff]  ;;  %v180_v7 = vpack.c.bf16 %v47_v4, %v46_v2  ;;  %v32_v11 = vld [vmem:[%s358_s2 + $0x10] sm:$0xff]  ;;  %v184_v12 = vpack.c.bf16 %v49_v10, %v48_v9 }
   0x4   :  { %v182_v8 = vpack.c.bf16 %v31_v6, %v30_v5  ;;  %19 = vmax.xlane.f32.xlu0 %v18_v3  ;;  %v33_v13 = vld [vmem:[%s358_s2 + $0x18] sm:$0xff]  ;;  %v50_v14 = vld [vmem:[%s358_s2 + $0xa0] sm:$0xff]  ;;  %v51_v15 = vld [vmem:[%s358_s2 + $0xa8] sm:$0xff] }
   0x5   :  { %181 = vmatprep.subr.bf16.mxu0 %v180_v7  ;;  %v186_v16 = vpack.c.bf16 %v33_v13, %v32_v11  ;;  %v188_v17 = vpack.c.bf16 %v51_v15, %v50_v14  ;;  %v34_v18 = vld [vmem:[%s358_s2 + $0x20] sm:$0xff]  ;;  %v35_v19 = vld [vmem:[%s358_s2 + $0x28] sm:$0xff]  ;;  %v52_v20 = vld [vmem:[%s358_s2 + $0xb0] sm:$0xff] }
   0x6   :  { %183 = vmatpush3.bf16.msra.mxu0 %v182_v8  ;;  %v53_v21 = vld [vmem:[%s358_s2 + $0xb8] sm:$0xff]  ;;  %v190_v22 = vpack.c.bf16 %v35_v19, %v34_v18  ;;  %v36_v24 = vld [vmem:[%s358_s2 + $0x30] sm:$0xff]  ;;  %v54_v27 = vld [vmem:[%s358_s2 + $0xc0] sm:$0xff] }
   0x7   :  { %185 = vmatprep.subr.bf16.mxu0 %v184_v12  ;;  %v192_v23 = vpack.c.bf16 %v53_v21, %v52_v20  ;;  %v37_v25 = vld [vmem:[%s358_s2 + $0x38] sm:$0xff]  ;;  %v55_v28 = vld [vmem:[%s358_s2 + $0xc8] sm:$0xff]  ;;  %v38_v30 = vld [vmem:[%s358_s2 + $0x40] sm:$0xff] }
   0x8   :  { %v194_v26 = vpack.c.bf16 %v37_v25, %v36_v24  ;;  %v196_v29 = vpack.c.bf16 %v55_v28, %v54_v27  ;;  %v39_v31 = vld [vmem:[%s358_s2 + $0x48] sm:$0xff]  ;;  %v56_v33 = vld [vmem:[%s358_s2 + $0xd0] sm:$0xff]  ;;  %v57_v34 = vld [vmem:[%s358_s2 + $0xd8] sm:$0xff] }
   0x9   :  { %v198_v32 = vpack.c.bf16 %v39_v31, %v38_v30  ;;  %v200_v35 = vpack.c.bf16 %v57_v34, %v56_v33  ;;  %v40_v36 = vld [vmem:[%s358_s2 + $0x50] sm:$0xff]  ;;  %v41_v37 = vld [vmem:[%s358_s2 + $0x58] sm:$0xff]  ;;  %v58_v39 = vld [vmem:[%s358_s2 + $0xe0] sm:$0xff] }
   0xa   :  { %187 = vmatpush3.bf16.msra.mxu0 %v186_v16  ;;  %v202_v38 = vpack.c.bf16 %v41_v37, %v40_v36  ;;  %v59_v40 = vld [vmem:[%s358_s2 + $0xe8] sm:$0xff]  ;;  %v42_v41 = vld [vmem:[%s358_s2 + $0x60] sm:$0xff]  ;;  %v60_v44 = vld [vmem:[%s358_s2 + $0xf0] sm:$0xff] }
   0xb   :  { %189 = vmatprep.subr.bf16.mxu0 %v188_v17  ;;  %v204_v42 = vpack.c.bf16 %v59_v40, %v58_v39  ;;  %v43_v43 = vld [vmem:[%s358_s2 + $0x68] sm:$0xff]  ;;  %v61_v45 = vld [vmem:[%s358_s2 + $0xf8] sm:$0xff]  ;;  %v44_v48 = vld [vmem:[%s358_s2 + $0x70] sm:$0xff] }
   0xc   :  { %v206_v46 = vpack.c.bf16 %v43_v43, %v42_v41  ;;  %v208_v47 = vpack.c.bf16 %v61_v45, %v60_v44  ;;  %v45_v49 = vld [vmem:[%s358_s2 + $0x78] sm:$0xff] }
   0xd   :  { %v210_v50 = vpack.c.bf16 %v45_v49, %v44_v48 }
   0xe   :  { %191 = vmatpush3.bf16.msra.mxu0 %v190_v22 }
   0xf   :  { %193 = vmatprep.subr.bf16.mxu0 %v192_v23 }
  0x12   :  { %195 = vmatpush3.bf16.msra.mxu0 %v194_v26 }
  0x13   :  { %197 = vmatprep.subr.bf16.mxu0 %v196_v29 }
  0x16   :  { %199 = vmatpush3.bf16.msra.mxu0 %v198_v32 }
  0x17   :  { %201 = vmatprep.subr.bf16.mxu0 %v200_v35 }
  0x1a   :  { %203 = vmatpush3.bf16.msra.mxu0 %v202_v38 }
  0x1b   :  { %205 = vmatprep.subr.bf16.mxu0 %v204_v42 }
  0x1e   :  { %207 = vmatpush3.bf16.msra.mxu0 %v206_v46 }
  0x1f   :  { %209 = vmatprep.subr.bf16.mxu0 %v208_v47 }
  0x22   :  { %211 = vmatpush3.bf16.msra.mxu0 %v210_v50 }
  0x91   :  { %v20_v51 = vpop.xlane.xlu0 %19 }
  0x92   :  { %v21_v53 = vsub.f32 %v244_v0, %v20_v51  ;;  %v22_v54 = vsub.f32 %v249_v1, %v20_v51 }
  0x94   :  { %v24_v55 = vmul.f32 %v23_v52, %v21_v53  ;;  %v25_v56 = vmul.f32 %v23_v52, %v22_v54 }
  0x96   :  { %v26_v57 = vmul.f32 1.442695, %v24_v55  ;;  %v28_v58 = vmul.f32 1.442695, %v25_v56 }
  0x98   :  { %214 = vpow2.f32 %v26_v57 }
  0x99   :  { %216 = vpow2.f32 %v28_v58 }
  0xa2   :  { %v215_v59 = vpop.eup %214 }
  0xa3   :  { %v217_v60 = vpop.eup %216 }
  0xa4   :  { %126 = vmatprep.mubr.f32.mxu0 %v217_v60 }
  0xa5   :  { %127 = vmatmul.mubr.f32.vlgmr.msra.gmra.mrb[0].mxu0 %v215_v59 }
 0x178   :  { %v177_v62 = vpop.f32.mrb[0].mxu0 }
 0x179   :  { %v178_v63 = vpop.f32.mrb[1].mxu0 }
 0x17a   :  { %v179_v2 = vadd.f32 %v178_v63, %v177_v62 }
 0x17c   :  { %218 = vrcp.f32 %v179_v2 }
 0x186   :  { %v219_v3 = vpop.eup %218 }
 0x187   :  { %135 = vperm.xlu0 %213, %v219_v3  }
 0x206   :  { %v136_v0 = vpop.permute.xlu0 %135 }
 0x207   :  { %v138_v1 = vmul.f32 %v179_v2, %v136_v0 }
 0x209   :  { %140 = vst.msk [vmem:[%s360_s3] sm:$0xff] %vm139_vm0, %v138_v1 }

</bundles_post_ra>
